<compile_context>
chip_gen: v6e
topology: v6e:2x2x1
jax: 0.10.0
libtpu: 0.0.40
codegen_flags: <defaults>
</compile_context>

<pallas_src>
import jax
import jax.numpy as jnp
from jax.experimental import pallas as pl
from jax.experimental.pallas import tpu as pltpu


def _round_up(x, m):
    return (x + m - 1) // m * m


def _lane_pad(n):
    return _round_up(max(int(n), 1), 128)


def _sublane_pad(n):
    return _round_up(max(int(n), 1), 8)


# ---------------------------------------------------------------------------
# Kernel
# ---------------------------------------------------------------------------
def _mlp_heads_kernel(obs_ref, w1_ref, b1_ref, w2_ref, b2_ref, wh_ref, bh_ref,
                      out_ref):
    # One batch tile per grid step. Weights/biases are grid-invariant
    # (index_map -> (0, 0)), so their blocks are fetched once and reused.
    x = obs_ref[...]                                          # (TB, obs_dim)

    h = jnp.dot(x, w1_ref[...], preferred_element_type=jnp.float32) + b1_ref[...]
    h = jnp.maximum(h, 0.0)                                   # f32 elementwise

    h = jnp.dot(h.astype(w2_ref.dtype), w2_ref[...],
                preferred_element_type=jnp.float32) + b2_ref[...]
    h = jnp.maximum(h, 0.0)

    # Fused (logits || value) head: one matmul, one narrow store.
    out = jnp.dot(h.astype(wh_ref.dtype), wh_ref[...],
                  preferred_element_type=jnp.float32) + bh_ref[...]
    out_ref[...] = out.astype(out_ref.dtype)


# ---------------------------------------------------------------------------
# One-time parameter preprocessing (hoisted out of the per-call path)
# ---------------------------------------------------------------------------
def prepare_params(params, compute_dtype=jnp.float32):
    """Fuse the logit/value heads and cast MXU operands ONCE (not per call)."""
    head_w = jnp.concatenate([params["wl"], params["wv"]], axis=1)   # (H, T+1)
    head_b = jnp.concatenate([params["bl"], params["bv"]], axis=1)   # (1, T+1)
    return dict(
        w1=params["w1"].astype(compute_dtype),
        b1=params["b1"].astype(jnp.float32),
        w2=params["w2"].astype(compute_dtype),
        b2=params["b2"].astype(jnp.float32),
        wh=head_w.astype(compute_dtype),
        bh=head_b.astype(jnp.float32),
    )


# ---------------------------------------------------------------------------
# VMEM sizing / batch-tile selection (per TPU generation)
# ---------------------------------------------------------------------------
def _vmem_budget_bytes():
    """Half of physical VMEM, capped at 64 MiB; conservative v7x fallback."""
    try:
        physical = int(pltpu.get_tpu_info().vmem_capacity_bytes)
    except Exception:
        physical = 64 << 20            # assume the smallest generation (v7x)
    return max(16 << 20, min(physical // 2, 64 << 20))


def _tile_vmem_bytes(tb, obs_dim, hidden, out_w, in_itemsize):
    """Conservative per-tile VMEM estimate (lane/sublane padded widths)."""
    rows = _sublane_pad(tb)
    obs_buf = rows * _lane_pad(obs_dim) * in_itemsize    # double-buffered input
    h_buf = rows * _lane_pad(hidden) * 4                 # f32 activations
    out_buf = rows * _lane_pad(out_w) * 4                # double-buffered output
    return 2 * obs_buf + 3 * h_buf + 3 * out_buf


def _fixed_vmem_bytes(obs_dim, hidden, out_w, in_itemsize):
    w = (_sublane_pad(obs_dim) * _lane_pad(hidden)
         + _sublane_pad(hidden) * _lane_pad(hidden)
         + _sublane_pad(hidden) * _lane_pad(out_w)) * in_itemsize
    b = (2 * _sublane_pad(1) * _lane_pad(hidden)
         + _sublane_pad(1) * _lane_pad(out_w)) * 4
    return 2 * (w + b)   # assume double-buffered even though grid-invariant


def _pick_batch_tile(B, tb_max, obs_dim, hidden, out_w, in_itemsize, budget):
    # Sublane granularity of the batch dim: 8 for f32 blocks, 16 for bf16.
    sub = 8 * max(1, 4 // max(in_itemsize, 1))
    per_row = _tile_vmem_bytes(sub, obs_dim, hidden, out_w, in_itemsize) // sub
    avail = budget - _fixed_vmem_bytes(obs_dim, hidden, out_w, in_itemsize) - (2 << 20)
    cap = max(sub, (avail // per_row) // sub * sub)
    tb_max = max(sub, (int(tb_max) // sub) * sub)
    tb = int(min(tb_max, cap))
    if B <= tb:
        # Force >=2 grid steps when possible so the "parallel" axis can shard
        # across v7x's two TensorCores (ragged tail handled, no padding copy).
        half = _round_up(pl.cdiv(B, 2), sub)
        tb = half if half < B else B
    return tb


# ---------------------------------------------------------------------------
# Forward
# ---------------------------------------------------------------------------
def subset_task_generator_forward(obs, prepped, *, tb_max=32768):
    """Pallas forward. obs: (B, obs_dim). Returns (logits (B,T), value (B,1))."""
    B, obs_dim = obs.shape
    hidden = prepped["w1"].shape[1]
    out_w = prepped["wh"].shape[1]          # num_tasks + 1 (fused value column)
    num_tasks = out_w - 1
    compute_dtype = prepped["w1"].dtype
    in_itemsize = jnp.dtype(compute_dtype).itemsize

    obs_k = obs.astype(compute_dtype)

    budget = _vmem_budget_bytes()
    tb = _pick_batch_tile(B, tb_max, obs_dim, hidden, out_w, in_itemsize, budget)
    grid = (pl.cdiv(B, tb),)                # ragged last block handled by Pallas

    # Advisory cost estimate (true head width, consistent B-based bytes).
    flops = 2 * B * (obs_dim * hidden + hidden * hidden + hidden * out_w)
    bytes_accessed = (B * obs_dim * in_itemsize
                      + (prepped["w1"].size + prepped["w2"].size
                         + prepped["wh"].size) * in_itemsize
                      + (prepped["b1"].size + prepped["b2"].size
                         + prepped["bh"].size) * 4
                      + B * out_w * 4)
    cost = pl.CostEstimate(flops=flops, transcendentals=0,
                           bytes_accessed=bytes_accessed)

    resident = lambda i: (0, 0)             # grid-invariant: loaded once

    fused = pl.pallas_call(
        _mlp_heads_kernel,
        out_shape=jax.ShapeDtypeStruct((B, out_w), jnp.float32),
        grid_spec=pltpu.PrefetchScalarGridSpec(
            num_scalar_prefetch=0,
            grid=grid,
            in_specs=[
                pl.BlockSpec((tb, obs_dim), lambda i: (i, 0)),   # obs tile
                pl.BlockSpec((obs_dim, hidden), resident),       # W1
                pl.BlockSpec((1, hidden), resident),             # b1
                pl.BlockSpec((hidden, hidden), resident),        # W2
                pl.BlockSpec((1, hidden), resident),             # b2
                pl.BlockSpec((hidden, out_w), resident),         # fused head W
                pl.BlockSpec((1, out_w), resident),              # fused head b
            ],
            out_specs=pl.BlockSpec((tb, out_w), lambda i: (i, 0)),
        ),
        compiler_params=pltpu.CompilerParams(
            dimension_semantics=("parallel",),
            vmem_limit_bytes=int(budget)),
        cost_estimate=cost,
    )(obs_k, prepped["w1"], prepped["b1"], prepped["w2"], prepped["b2"],
      prepped["wh"], prepped["bh"])

    logits = fused[:, :num_tasks]
    value = fused[:, num_tasks:]
    return logits, value


# ---------------------------------------------------------------------------
# Synthetic params / pure-JAX reference
# ---------------------------------------------------------------------------
def init_params(key, obs_dim, hidden_dim, num_tasks):
    """Deterministic synthetic parameters (shapes match the nn.Linear layers)."""
    ks = jax.random.split(key, 8)

    def lin(kw, kb, fan_in, fan_out):
        bound = 1.0 / jnp.sqrt(fan_in)
        w = jax.random.uniform(kw, (fan_in, fan_out), jnp.float32, -bound, bound)
        b = jax.random.uniform(kb, (1, fan_out), jnp.float32, -bound, bound)
        return w, b

    w1, b1 = lin(ks[0], ks[1], obs_dim, hidden_dim)
    w2, b2 = lin(ks[2], ks[3], hidden_dim, hidden_dim)
    wl, bl = lin(ks[4], ks[5], hidden_dim, num_tasks)
    wv, bv = lin(ks[6], ks[7], hidden_dim, 1)
    return dict(w1=w1, b1=b1, w2=w2, b2=b2, wl=wl, bl=bl, wv=wv, bv=bv)


def reference_forward(obs, p):
    h = jnp.maximum(obs @ p["w1"] + p["b1"], 0.0)
    h = jnp.maximum(h @ p["w2"] + p["b2"], 0.0)
    return h @ p["wl"] + p["bl"], h @ p["wv"] + p["bv"]


if __name__ == "__main__":
    B, obs_dim, hidden_dim, num_tasks = 2, 16, 32, 8

    key = jax.random.PRNGKey(0)
    k_obs, k_par, k_obs2 = jax.random.split(key, 3)
    obs = jax.random.normal(k_obs, (B, obs_dim), jnp.float32)
    params = init_params(k_par, obs_dim, hidden_dim, num_tasks)

    prepped = prepare_params(params)                 # one-time fuse + cast (f32)

    fwd = jax.jit(subset_task_generator_forward)
    logits, value = fwd(obs, prepped)
    jax.block_until_ready((logits, value))

    ref_logits, ref_value = reference_forward(obs, params)
    assert logits.shape == (B, num_tasks) and value.shape == (B, 1)
    assert jnp.allclose(logits, ref_logits, atol=1e-5)
    assert jnp.allclose(value, ref_value, atol=1e-5)

    # Multi-step grid with a ragged tail (20 rows -> 2 tiles of 16, last tile
    # partially valid): exercises the >=2-step / partial-block path (v7x TCs).
    B2 = 20
    obs2 = jax.random.normal(k_obs2, (B2, obs_dim), jnp.float32)
    logits2, value2 = subset_task_generator_forward(obs2, prepped)
    jax.block_until_ready((logits2, value2))
    ref_logits2, ref_value2 = reference_forward(obs2, params)
    assert logits2.shape == (B2, num_tasks) and value2.shape == (B2, 1)
    assert jnp.allclose(logits2, ref_logits2, atol=1e-5)
    assert jnp.allclose(value2, ref_value2, atol=1e-5)

    # Small-tile override (grid of 3, ragged last tile of 4 rows).
    logits3, value3 = subset_task_generator_forward(obs2, prepped, tb_max=8)
    jax.block_until_ready((logits3, value3))
    assert jnp.allclose(logits3, ref_logits2, atol=1e-5)
    assert jnp.allclose(value3, ref_value2, atol=1e-5)

    # bf16 MXU-operand path (halves obs HBM reads on v6e/v7x); f32 accumulate.
    prepped_bf16 = prepare_params(params, compute_dtype=jnp.bfloat16)
    logits4, value4 = subset_task_generator_forward(obs2, prepped_bf16)
    jax.block_until_ready((logits4, value4))
    assert jnp.allclose(logits4, ref_logits2, atol=5e-2, rtol=5e-2)
    assert jnp.allclose(value4, ref_value2, atol=5e-2, rtol=5e-2)

    # TODO(synk): act()/evaluate_actions() Gumbel-sigmoid sampling, Bernoulli
    # log-prob/entropy and actions_to_taskspecs stay in plain JAX / host code
    # (distribution + bookkeeping logic, not the kernel hot path).
    print("KERNEL_OK")
</pallas_src>

<mosaic_0001>
module attributes {stable_mosaic.version = 11 : i64} {
  func.func @_mlp_heads_kernel(%arg0: i32, %arg1: memref<2x16xf32, #tpu.memory_space<vmem>>, %arg2: memref<16x32xf32, #tpu.memory_space<vmem>>, %arg3: memref<1x32xf32, #tpu.memory_space<vmem>>, %arg4: memref<32x32xf32, #tpu.memory_space<vmem>>, %arg5: memref<1x32xf32, #tpu.memory_space<vmem>>, %arg6: memref<32x9xf32, #tpu.memory_space<vmem>>, %arg7: memref<1x9xf32, #tpu.memory_space<vmem>>, %arg8: memref<2x9xf32, #tpu.memory_space<vmem>>) attributes {dimension_semantics = [#tpu.dimension_semantics<parallel>], iteration_bounds = array<i64: 1>, scalar_prefetch = 0 : i64, scratch_operands = 0 : i64, tpu.core_type = #tpu.core_type<tc>, window_params = [{transform_indices = @transform_0, window_bounds = array<i64: 2, 16>}, {pipeline_mode = #tpu.pipeline_mode<synchronous>, transform_indices = @transform_1, window_bounds = array<i64: 16, 32>}, {pipeline_mode = #tpu.pipeline_mode<synchronous>, transform_indices = @transform_2, window_bounds = array<i64: 1, 32>}, {pipeline_mode = #tpu.pipeline_mode<synchronous>, transform_indices = @transform_3, window_bounds = array<i64: 32, 32>}, {pipeline_mode = #tpu.pipeline_mode<synchronous>, transform_indices = @transform_4, window_bounds = array<i64: 1, 32>}, {pipeline_mode = #tpu.pipeline_mode<synchronous>, transform_indices = @transform_5, window_bounds = array<i64: 32, 9>}, {pipeline_mode = #tpu.pipeline_mode<synchronous>, transform_indices = @transform_6, window_bounds = array<i64: 1, 9>}, {transform_indices = @transform_7, window_bounds = array<i64: 2, 9>}]} {
    %c0 = arith.constant 0 : index
    %c0_0 = arith.constant 0 : index
    %0 = vector.load %arg1[%c0, %c0_0] : memref<2x16xf32, #tpu.memory_space<vmem>>, vector<2x16xf32>
    %c0_1 = arith.constant 0 : index
    %c0_2 = arith.constant 0 : index
    %1 = vector.load %arg2[%c0_1, %c0_2] : memref<16x32xf32, #tpu.memory_space<vmem>>, vector<16x32xf32>
    %cst = arith.constant dense<0.000000e+00> : vector<2x32xf32>
    %2 = tpu.matmul %0, %1, %cst {dimension_numbers = #tpu.dot_dimension_numbers<[1], [0], [0], [1], [0, 0, 1, 1], [], []>} : vector<2x16xf32>, vector<16x32xf32>, vector<2x32xf32> -> vector<2x32xf32>
    %c0_3 = arith.constant 0 : index
    %c0_4 = arith.constant 0 : index
    %3 = vector.load %arg3[%c0_3, %c0_4] : memref<1x32xf32, #tpu.memory_space<vmem>>, vector<1x32xf32>
    %4 = vector.broadcast %3 : vector<1x32xf32> to vector<2x32xf32>
    %5 = arith.addf %2, %4 : vector<2x32xf32>
    %cst_5 = arith.constant 0.000000e+00 : f32
    %6 = vector.broadcast %cst_5 : f32 to vector<2x32xf32>
    %7 = arith.maximumf %5, %6 : vector<2x32xf32>
    %c0_6 = arith.constant 0 : index
    %c0_7 = arith.constant 0 : index
    %8 = vector.load %arg4[%c0_6, %c0_7] : memref<32x32xf32, #tpu.memory_space<vmem>>, vector<32x32xf32>
    %cst_8 = arith.constant dense<0.000000e+00> : vector<2x32xf32>
    %9 = tpu.matmul %7, %8, %cst_8 {dimension_numbers = #tpu.dot_dimension_numbers<[1], [0], [0], [1], [0, 0, 1, 1], [], []>} : vector<2x32xf32>, vector<32x32xf32>, vector<2x32xf32> -> vector<2x32xf32>
    %c0_9 = arith.constant 0 : index
    %c0_10 = arith.constant 0 : index
    %10 = vector.load %arg5[%c0_9, %c0_10] : memref<1x32xf32, #tpu.memory_space<vmem>>, vector<1x32xf32>
    %11 = vector.broadcast %10 : vector<1x32xf32> to vector<2x32xf32>
    %12 = arith.addf %9, %11 : vector<2x32xf32>
    %cst_11 = arith.constant 0.000000e+00 : f32
    %13 = vector.broadcast %cst_11 : f32 to vector<2x32xf32>
    %14 = arith.maximumf %12, %13 : vector<2x32xf32>
    %c0_12 = arith.constant 0 : index
    %c0_13 = arith.constant 0 : index
    %15 = vector.load %arg6[%c0_12, %c0_13] : memref<32x9xf32, #tpu.memory_space<vmem>>, vector<32x9xf32>
    %cst_14 = arith.constant dense<0.000000e+00> : vector<2x9xf32>
    %16 = tpu.matmul %14, %15, %cst_14 {dimension_numbers = #tpu.dot_dimension_numbers<[1], [0], [0], [1], [0, 0, 1, 1], [], []>} : vector<2x32xf32>, vector<32x9xf32>, vector<2x9xf32> -> vector<2x9xf32>
    %c0_15 = arith.constant 0 : index
    %c0_16 = arith.constant 0 : index
    %17 = vector.load %arg7[%c0_15, %c0_16] : memref<1x9xf32, #tpu.memory_space<vmem>>, vector<1x9xf32>
    %18 = vector.broadcast %17 : vector<1x9xf32> to vector<2x9xf32>
    %19 = arith.addf %16, %18 : vector<2x9xf32>
    %c0_17 = arith.constant 0 : index
    %c0_18 = arith.constant 0 : index
    %20 = vector.load %arg8[%c0_17, %c0_18] : memref<2x9xf32, #tpu.memory_space<vmem>>, vector<2x9xf32>
    tpu.vector_store %arg8[%c0_17, %c0_18], %19 {strides = array<i32>} : memref<2x9xf32, #tpu.memory_space<vmem>>, vector<2x9xf32>,
    return
  }
  func.func @transform_0(%arg0: i32) -> (i32, i32) {
    %c0_i32 = arith.constant 0 : i32
    %c0_i32_0 = arith.constant 0 : i32
    return %arg0, %c0_i32 : i32, i32
  }
  func.func @transform_1(%arg0: i32) -> (i32, i32) {
    %c0_i32 = arith.constant 0 : i32
    %c0_i32_0 = arith.constant 0 : i32
    %c0_i32_1 = arith.constant 0 : i32
    return %c0_i32, %c0_i32_0 : i32, i32
  }
  func.func @transform_2(%arg0: i32) -> (i32, i32) {
    %c0_i32 = arith.constant 0 : i32
    %c0_i32_0 = arith.constant 0 : i32
    %c0_i32_1 = arith.constant 0 : i32
    return %c0_i32, %c0_i32_0 : i32, i32
  }
  func.func @transform_3(%arg0: i32) -> (i32, i32) {
    %c0_i32 = arith.constant 0 : i32
    %c0_i32_0 = arith.constant 0 : i32
    %c0_i32_1 = arith.constant 0 : i32
    return %c0_i32, %c0_i32_0 : i32, i32
  }
  func.func @transform_4(%arg0: i32) -> (i32, i32) {
    %c0_i32 = arith.constant 0 : i32
    %c0_i32_0 = arith.constant 0 : i32
    %c0_i32_1 = arith.constant 0 : i32
    return %c0_i32, %c0_i32_0 : i32, i32
  }
  func.func @transform_5(%arg0: i32) -> (i32, i32) {
    %c0_i32 = arith.constant 0 : i32
    %c0_i32_0 = arith.constant 0 : i32
    %c0_i32_1 = arith.constant 0 : i32
    return %c0_i32, %c0_i32_0 : i32, i32
  }
  func.func @transform_6(%arg0: i32) -> (i32, i32) {
    %c0_i32 = arith.constant 0 : i32
    %c0_i32_0 = arith.constant 0 : i32
    %c0_i32_1 = arith.constant 0 : i32
    return %c0_i32, %c0_i32_0 : i32, i32
  }
  func.func @transform_7(%arg0: i32) -> (i32, i32) {
    %c0_i32 = arith.constant 0 : i32
    %c0_i32_0 = arith.constant 0 : i32
    return %arg0, %c0_i32 : i32, i32
  }
}

</mosaic_0001>

<bundles_post_ra>
// kernel: subset_task_generator_forward.1
= control target key start
LH: loop header
LB: loop body
LE: loop exit
PB: predicated region body
PF: predicated region fallthrough
CT: control target
= control target key end

     0   :  { %v337_v0 = vmov 0.0   ;;  %vm338_vm0 = vmmov 0   ;;  %vm36_vm1 = vcmask 130048   ;;  %vm122_vm2 = vcmask 261120   ;;  %s426_s1 = inlined_call_operand.vmem [shape: f32[16,32], index: 1, kind: input, shape index: {}]   ;;  %s427_s0 = inlined_call_operand.vmem [shape: f32[2,16], index: 0, kind: input, shape index: {}]   ;;  %s428_s3 = inlined_call_operand.vmem [shape: f32[32,32], index: 3, kind: input, shape index: {}]   ;;  %s429_s5 = inlined_call_operand.vmem [shape: f32[32,9], index: 5, kind: input, shape index: {}]   ;;  %s430_s2 = inlined_call_operand.vmem [shape: f32[1,32], index: 2, kind: input, shape index: {}]   ;;  %s431_s4 = inlined_call_operand.vmem [shape: f32[1,32], index: 4, kind: input, shape index: {}]   ;;  %s432_s6 = inlined_call_operand.vmem [shape: f32[1,9], index: 6, kind: input, shape index: {}]   ;;  %s433_s7 = inlined_call_operand.vmem [shape: f32[2,9], index: 7, kind: output, shape index: {}]  }
   0x1   :  { %306 = vmatprep.subr.mxu0 %v337_v0  ;;  %v28_v1 = vld [vmem:[%s426_s1 + $0x8] sm:$0xff]  ;;  %v27_v2 = vld [vmem:[%s426_s1] sm:$0xff]  ;;  %310 = vmatprep.mubr.msk.f32.mxu0 %vm338_vm0, %v337_v0  ;;  %v114_v4 = vld [vmem:[%s428_s3 + $0x18] sm:$0xff]  ;;  %vm281_vm3 = vcmask 66560  }
   0x2   :  { %307 = vmatpush3.msra.mxu0 %v28_v1  ;;  %v26_v3 = vld [vmem:[%s427_s0] sm:$0x3]  ;;  %313 = vmatprep.subr.mxu1 %v337_v0  ;;  %v113_v5 = vld [vmem:[%s428_s3 + $0x10] sm:$0xff]  ;;  %v112_v6 = vld [vmem:[%s428_s3 + $0x8] sm:$0xff] }
   0x3   :  { %308 = vmatprep.subr.mxu0 %v337_v0  ;;  %314 = vmatpush3.msra.mxu1 %v114_v4  ;;  %v111_v7 = vld [vmem:[%s428_s3] sm:$0xff]  ;;  %v200_v8 = vld [vmem:[%s429_s5 + $0x18] sm:$0xff]  ;;  %v199_v14 = vld [vmem:[%s429_s5 + $0x10] sm:$0xff] }
   0x4   :  { %309 = vmatpush3.msra.mxu0 %v27_v2  ;;  %315 = vmatprep.subr.mxu1 %v337_v0  ;;  %v287_v9 = vld [vmem:[%s430_s2] ss:$0 sm:$0xff]  ;;  %v198_v15 = vld [vmem:[%s429_s5 + $0x8] sm:$0xff] }
   0x5   :  { %311 = vmatmul.mubr.msk.f32.vlgmr.msra.gmra.mxu0 %vm36_vm1, %v26_v3  ;;  %321 = vmatprep.mubr.msk.f32.mxu1 %vm338_vm0, %v337_v0  ;;  %v197_v16 = vld [vmem:[%s429_s5] sm:$0xff] }
   0x6   :  { %324 = vmatprep.subr.mxu0 %v337_v0  ;;  %332 = vmatprep.mubr.msk.f32.mxu0 %vm338_vm0, %v337_v0  ;;  %v289_v17 = vld [vmem:[%s431_s4] ss:$0 sm:$0xff] }
   0x7   :  { %316 = vmatpush3.msra.mxu1 %v113_v5  ;;  %325 = vmatpush3.msra.mxu0 %v200_v8  ;;  %v291_v22 = vld [vmem:[%s432_s6] ss:$0 sm:$0xff] }
   0x8   :  { %317 = vmatprep.subr.mxu1 %v337_v0  ;;  %326 = vmatprep.subr.mxu0 %v337_v0 }
   0x9   :  { %318 = vmatpush3.msra.mxu1 %v112_v6  ;;  %327 = vmatpush3.msra.mxu0 %v199_v14 }
   0xa   :  { %319 = vmatprep.subr.mxu1 %v337_v0  ;;  %328 = vmatprep.subr.mxu0 %v337_v0 }
   0xb   :  { %320 = vmatpush3.msra.mxu1 %v111_v7  ;;  %329 = vmatpush3.msra.mxu0 %v198_v15 }
   0xc   :  { %330 = vmatprep.subr.mxu0 %v337_v0 }
   0xd   :  { %331 = vmatpush3.msra.mxu0 %v197_v16 }
  0xc5   :  { %v106_v10 = vpop.f32.mrf.mxu0 }
  0xc6   :  { %v107_v11 = vadd.f32 %v287_v9, %v106_v10 }
  0xc7   :  { %v312_v12 = vpop.f32.mrf.mxu0 }
  0xc8   :  { %v110_v13 = vmax.f32 %v107_v11, 0.0 }
  0xca   :  { %322 = vmatmul.mubr.msk.f32.vlgmr.msra.gmra.mxu1 %vm122_vm2, %v110_v13 }
 0x18a   :  { %v192_v18 = vpop.f32.mrf.mxu1 }
 0x18b   :  { %v193_v19 = vadd.f32 %v289_v17, %v192_v18 }
 0x18c   :  { %v323_v20 = vpop.f32.mrf.mxu1 }
 0x18d   :  { %v196_v21 = vmax.f32 %v193_v19, 0.0 }
 0x18f   :  { %333 = vmatmul.mubr.msk.f32.vlgmr.msra.gmra.mxu0 %vm122_vm2, %v196_v21 }
 0x24f   :  { %v277_v23 = vpop.f32.mrf.mxu0 }
 0x250   :  { %v278_v24 = vadd.f32 %v291_v22, %v277_v23 }
 0x251   :  { %v334_v25 = vpop.f32.mrf.mxu0 }
 0x252   :  { %282 = vst.msk [vmem:[%s433_s7] sm:$0x3] %vm281_vm3, %v278_v24 }

</bundles_post_ra>
